<compile_context>
chip_gen: v5e
topology: v5e:2x2
jax: 0.10.0
libtpu: 0.0.40
codegen_flags: <defaults>
</compile_context>

<pallas_src>
import functools
from math import sqrt

import jax
import jax.numpy as jnp
from jax.experimental import pallas as pl
from jax.experimental.pallas import tpu as pltpu


def self_attention_kernel(x_ref, wqkv_ref, wo_ref, o_ref,
                          q_s, k_s, v_s, *, n_heads, tq):
    """One grid step == (one batch element, one query tile).

    x_ref    : (1, L, D)    batch slice (index map constant over query tiles)
    wqkv_ref : (D, 3D)      fused [W_q/scale | W_k | W_v], already (in, out)
    wo_ref   : (H, dh, D)   per-head output projection, already (in, out)
    o_ref    : (1, tq, D)   output tile
    q_s/k_s/v_s : (H, L, dh) head-major Q/K/V scratch (persists across q tiles)
    """
    qi = pl.program_id(1)
    H = n_heads
    L = x_ref.shape[1]
    D = x_ref.shape[2]
    dh = D // H

    @pl.when(qi == 0)
    def _():
        # Fused Q/K/V projection for the whole sequence, once per batch element.
        x = x_ref[0]                                               # (L, D)
        qkv = jnp.dot(x, wqkv_ref[...],
                      preferred_element_type=jnp.float32)          # (L, 3D), f32 acc
        qkv = qkv.astype(q_s.dtype)
        # Scatter into head-major scratch once (amortized over all query tiles);
        # this replaces per-head lane slicing / concat in the hot loop.
        for h in range(H):
            q_s[h] = qkv[:, h * dh:(h + 1) * dh]
            k_s[h] = qkv[:, D + h * dh:D + (h + 1) * dh]
            v_s[h] = qkv[:, 2 * D + h * dh:2 * D + (h + 1) * dh]

    q0 = pl.multiple_of(qi * tq, tq)
    q = q_s[:, pl.ds(q0, tq), :]                                   # (H, tq, dh)
    k = k_s[...]                                                   # (H, L, dh)
    v = v_s[...]                                                   # (H, L, dh)

    # Scores: 1/sqrt(dh) is already folded into W_q.  Softmax math in f32.
    s = jnp.einsum('hqd,hkd->hqk', q, k,
                   preferred_element_type=jnp.float32)             # (H, tq, L)
    m = jnp.max(s, axis=-1, keepdims=True)
    p = jnp.exp(s - m)
    denom = jnp.sum(p, axis=-1, keepdims=True)
    p = p * pl.reciprocal(denom, approx=True)                      # EUP, not a VPU divide

    ctx = jnp.einsum('hqk,hkd->hqd', p.astype(v.dtype), v,
                     preferred_element_type=jnp.float32)           # (H, tq, dh)

    # Output projection with per-head weight blocks, then reduce over heads.
    out_h = jnp.einsum('hqd,hdk->hqk', ctx.astype(wo_ref.dtype), wo_ref[...],
                       preferred_element_type=jnp.float32)         # (H, tq, D)
    o_ref[0] = jnp.sum(out_h, axis=0).astype(o_ref.dtype)


def self_attention(x, wq, wk, wv, wo, *, n_heads, tq=None):
    B, L, D = x.shape
    assert D % n_heads == 0
    dh = D // n_heads
    scale = sqrt(D / n_heads)

    # Query-tile size: whole sequence for short L, otherwise tile it.
    if tq is None:
        if L <= 256:
            tq = L
        elif L % 256 == 0:
            tq = 256
        elif L % 128 == 0:
            tq = 128
        else:
            tq = L
    assert L % tq == 0 and (tq == L or tq % 8 == 0)
    nq = L // tq

    # Pre-transpose weights to (in, out), fold the attention scale into W_q and
    # fuse Q/K/V into a single (D, 3D) weight.  W_o is pre-split per head so the
    # kernel can project without re-concatenating heads along lanes.
    w_qkv = jnp.concatenate([wq.T / scale, wk.T, wv.T], axis=1)    # (D, 3D)
    wo_heads = wo.T.reshape(n_heads, dh, D)                        # (H, dh, D)

    kernel = functools.partial(self_attention_kernel, n_heads=n_heads, tq=tq)

    flops = B * (8 * L * D * D + 4 * L * L * D)
    transcendentals = B * n_heads * L * L
    bytes_accessed = (2 * B * L * D + 4 * D * D) * x.dtype.itemsize

    return pl.pallas_call(
        kernel,
        out_shape=jax.ShapeDtypeStruct((B, L, D), x.dtype),
        grid_spec=pltpu.PrefetchScalarGridSpec(
            num_scalar_prefetch=0,
            grid=(B, nq),
            in_specs=[
                pl.BlockSpec((1, L, D), lambda b, q: (b, 0, 0)),       # x (per batch)
                pl.BlockSpec((D, 3 * D), lambda b, q: (0, 0)),         # fused W_qkv
                pl.BlockSpec((n_heads, dh, D), lambda b, q: (0, 0, 0)),  # W_o per head
            ],
            out_specs=pl.BlockSpec((1, tq, D), lambda b, q: (b, q, 0)),
            scratch_shapes=[
                pltpu.VMEM((n_heads, L, dh), x.dtype),   # Q (head-major)
                pltpu.VMEM((n_heads, L, dh), x.dtype),   # K
                pltpu.VMEM((n_heads, L, dh), x.dtype),   # V
            ],
        ),
        compiler_params=pltpu.CompilerParams(
            dimension_semantics=("parallel", "arbitrary"),
            vmem_limit_bytes=64 * 1024 * 1024,
        ),
        cost_estimate=pl.CostEstimate(
            flops=flops,
            transcendentals=transcendentals,
            bytes_accessed=bytes_accessed,
        ),
    )(x, w_qkv, wo_heads)


def self_attention_ref(x, wq, wk, wv, wo, *, n_heads):
    """Plain-JAX reference mirroring the PyTorch forward."""
    B, L, D = x.shape
    dh = D // n_heads
    scale = sqrt(D / n_heads)
    q = (x @ wq.T).reshape(B, L, n_heads, dh).transpose(0, 2, 1, 3)
    k = (x @ wk.T).reshape(B, L, n_heads, dh).transpose(0, 2, 1, 3)
    v = (x @ wv.T).reshape(B, L, n_heads, dh).transpose(0, 2, 1, 3)
    attn = jnp.einsum("bhqd,bhkd->bhqk", q, k) / scale
    attn = jax.nn.softmax(attn, axis=-1)
    ctx = jnp.einsum("bhqk,bhkd->bhqd", attn, v)
    ctx = ctx.transpose(0, 2, 1, 3).reshape(B, L, D)
    return ctx @ wo.T


if __name__ == "__main__":
    B, L, d_model, n_heads = 2, 8, 32, 4

    key = jax.random.PRNGKey(0)
    kx, kq, kk, kv, ko = jax.random.split(key, 5)
    x = jax.random.normal(kx, (B, L, d_model), dtype=jnp.float32)
    # nn.Linear(d_model, d_model, bias=False) weights: (out, in)
    wq = jax.random.normal(kq, (d_model, d_model), dtype=jnp.float32) * 0.1
    wk = jax.random.normal(kk, (d_model, d_model), dtype=jnp.float32) * 0.1
    wv = jax.random.normal(kv, (d_model, d_model), dtype=jnp.float32) * 0.1
    wo = jax.random.normal(ko, (d_model, d_model), dtype=jnp.float32) * 0.1

    out = self_attention(x, wq, wk, wv, wo, n_heads=n_heads)
    out = jax.block_until_ready(out)

    ref = self_attention_ref(x, wq, wk, wv, wo, n_heads=n_heads)
    assert out.shape == (B, L, d_model)
    # Tolerance relaxed slightly vs. exact f32 because the softmax denominator
    # uses the approximate EUP reciprocal (pl.reciprocal(..., approx=True)).
    assert jnp.allclose(out, ref, atol=2e-3, rtol=2e-3), "mismatch vs reference"

    print("KERNEL_OK")
</pallas_src>

<mosaic_0001>
module attributes {stable_mosaic.version = 11 : i64} {
  func.func @self_attention_kernel(%arg0: i32, %arg1: i32, %arg2: memref<1x8x32xf32, #tpu.memory_space<vmem>>, %arg3: memref<32x96xf32, #tpu.memory_space<vmem>>, %arg4: memref<4x8x32xf32, #tpu.memory_space<vmem>>, %arg5: memref<1x8x32xf32, #tpu.memory_space<vmem>>, %arg6: memref<4x8x8xf32, #tpu.memory_space<vmem>>, %arg7: memref<4x8x8xf32, #tpu.memory_space<vmem>>, %arg8: memref<4x8x8xf32, #tpu.memory_space<vmem>>) attributes {dimension_semantics = [#tpu.dimension_semantics<parallel>, #tpu.dimension_semantics<arbitrary>], iteration_bounds = array<i64: 2, 1>, scalar_prefetch = 0 : i64, scratch_operands = 3 : i64, tpu.core_type = #tpu.core_type<tc>, window_params = [{transform_indices = @transform_0, window_bounds = array<i64: 1, 8, 32>}, {pipeline_mode = #tpu.pipeline_mode<synchronous>, transform_indices = @transform_1, window_bounds = array<i64: 32, 96>}, {pipeline_mode = #tpu.pipeline_mode<synchronous>, transform_indices = @transform_2, window_bounds = array<i64: 4, 8, 32>}, {transform_indices = @transform_3, window_bounds = array<i64: 1, 8, 32>}]} {
    %c0_i32 = arith.constant 0 : i32
    %0 = arith.cmpi eq, %arg1, %c0_i32 : i32
    %1 = arith.extui %0 : i1 to i32
    %c0_i32_0 = arith.constant 0 : i32
    %2 = arith.cmpi ne, %1, %c0_i32_0 : i32
    scf.if %2 {
      %c0_19 = arith.constant 0 : index
      %c0_20 = arith.constant 0 : index
      %c0_21 = arith.constant 0 : index
      %27 = vector.load %arg2[%c0_19, %c0_20, %c0_21] : memref<1x8x32xf32, #tpu.memory_space<vmem>>, vector<1x8x32xf32>
      %28 = vector.shape_cast %27 : vector<1x8x32xf32> to vector<8x32xf32>
      %c0_22 = arith.constant 0 : index
      %c0_23 = arith.constant 0 : index
      %29 = vector.load %arg3[%c0_22, %c0_23] : memref<32x96xf32, #tpu.memory_space<vmem>>, vector<32x96xf32>
      %cst_24 = arith.constant dense<0.000000e+00> : vector<8x96xf32>
      %30 = tpu.matmul %28, %29, %cst_24 {dimension_numbers = #tpu.dot_dimension_numbers<[1], [0], [0], [1], [0, 0, 1, 1], [], []>} : vector<8x32xf32>, vector<32x96xf32>, vector<8x96xf32> -> vector<8x96xf32>
      %31 = vector.extract_strided_slice %30 {offsets = [0, 0], sizes = [8, 8], strides = [1, 1]} : vector<8x96xf32> to vector<8x8xf32>
      %c0_25 = arith.constant 0 : index
      %c0_26 = arith.constant 0 : index
      %c0_27 = arith.constant 0 : index
      %32 = vector.load %arg6[%c0_25, %c0_26, %c0_27] : memref<4x8x8xf32, #tpu.memory_space<vmem>>, vector<1x8x8xf32>
      %33 = vector.shape_cast %32 : vector<1x8x8xf32> to vector<8x8xf32>
      %34 = vector.shape_cast %31 : vector<8x8xf32> to vector<1x8x8xf32>
      tpu.vector_store %arg6[%c0_25, %c0_26, %c0_27], %34 {strides = array<i32>} : memref<4x8x8xf32, #tpu.memory_space<vmem>>, vector<1x8x8xf32>,
      %35 = vector.extract_strided_slice %30 {offsets = [0, 32], sizes = [8, 8], strides = [1, 1]} : vector<8x96xf32> to vector<8x8xf32>
      %c0_28 = arith.constant 0 : index
      %c0_29 = arith.constant 0 : index
      %c0_30 = arith.constant 0 : index
      %36 = vector.load %arg7[%c0_28, %c0_29, %c0_30] : memref<4x8x8xf32, #tpu.memory_space<vmem>>, vector<1x8x8xf32>
      %37 = vector.shape_cast %36 : vector<1x8x8xf32> to vector<8x8xf32>
      %38 = vector.shape_cast %35 : vector<8x8xf32> to vector<1x8x8xf32>
      tpu.vector_store %arg7[%c0_28, %c0_29, %c0_30], %38 {strides = array<i32>} : memref<4x8x8xf32, #tpu.memory_space<vmem>>, vector<1x8x8xf32>,
      %39 = vector.extract_strided_slice %30 {offsets = [0, 64], sizes = [8, 8], strides = [1, 1]} : vector<8x96xf32> to vector<8x8xf32>
      %c0_31 = arith.constant 0 : index
      %c0_32 = arith.constant 0 : index
      %c0_33 = arith.constant 0 : index
      %40 = vector.load %arg8[%c0_31, %c0_32, %c0_33] : memref<4x8x8xf32, #tpu.memory_space<vmem>>, vector<1x8x8xf32>
      %41 = vector.shape_cast %40 : vector<1x8x8xf32> to vector<8x8xf32>
      %42 = vector.shape_cast %39 : vector<8x8xf32> to vector<1x8x8xf32>
      tpu.vector_store %arg8[%c0_31, %c0_32, %c0_33], %42 {strides = array<i32>} : memref<4x8x8xf32, #tpu.memory_space<vmem>>, vector<1x8x8xf32>,
      %43 = vector.extract_strided_slice %30 {offsets = [0, 8], sizes = [8, 8], strides = [1, 1]} : vector<8x96xf32> to vector<8x8xf32>
      %c1 = arith.constant 1 : index
      %c0_34 = arith.constant 0 : index
      %c0_35 = arith.constant 0 : index
      %44 = vector.load %arg6[%c1, %c0_34, %c0_35] : memref<4x8x8xf32, #tpu.memory_space<vmem>>, vector<1x8x8xf32>
      %45 = vector.shape_cast %44 : vector<1x8x8xf32> to vector<8x8xf32>
      %46 = vector.shape_cast %43 : vector<8x8xf32> to vector<1x8x8xf32>
      tpu.vector_store %arg6[%c1, %c0_34, %c0_35], %46 {strides = array<i32>} : memref<4x8x8xf32, #tpu.memory_space<vmem>>, vector<1x8x8xf32>,
      %47 = vector.extract_strided_slice %30 {offsets = [0, 40], sizes = [8, 8], strides = [1, 1]} : vector<8x96xf32> to vector<8x8xf32>
      %c1_36 = arith.constant 1 : index
      %c0_37 = arith.constant 0 : index
      %c0_38 = arith.constant 0 : index
      %48 = vector.load %arg7[%c1_36, %c0_37, %c0_38] : memref<4x8x8xf32, #tpu.memory_space<vmem>>, vector<1x8x8xf32>
      %49 = vector.shape_cast %48 : vector<1x8x8xf32> to vector<8x8xf32>
      %50 = vector.shape_cast %47 : vector<8x8xf32> to vector<1x8x8xf32>
      tpu.vector_store %arg7[%c1_36, %c0_37, %c0_38], %50 {strides = array<i32>} : memref<4x8x8xf32, #tpu.memory_space<vmem>>, vector<1x8x8xf32>,
      %51 = vector.extract_strided_slice %30 {offsets = [0, 72], sizes = [8, 8], strides = [1, 1]} : vector<8x96xf32> to vector<8x8xf32>
      %c1_39 = arith.constant 1 : index
      %c0_40 = arith.constant 0 : index
      %c0_41 = arith.constant 0 : index
      %52 = vector.load %arg8[%c1_39, %c0_40, %c0_41] : memref<4x8x8xf32, #tpu.memory_space<vmem>>, vector<1x8x8xf32>
      %53 = vector.shape_cast %52 : vector<1x8x8xf32> to vector<8x8xf32>
      %54 = vector.shape_cast %51 : vector<8x8xf32> to vector<1x8x8xf32>
      tpu.vector_store %arg8[%c1_39, %c0_40, %c0_41], %54 {strides = array<i32>} : memref<4x8x8xf32, #tpu.memory_space<vmem>>, vector<1x8x8xf32>,
      %55 = vector.extract_strided_slice %30 {offsets = [0, 16], sizes = [8, 8], strides = [1, 1]} : vector<8x96xf32> to vector<8x8xf32>
      %c2 = arith.constant 2 : index
      %c0_42 = arith.constant 0 : index
      %c0_43 = arith.constant 0 : index
      %56 = vector.load %arg6[%c2, %c0_42, %c0_43] : memref<4x8x8xf32, #tpu.memory_space<vmem>>, vector<1x8x8xf32>
      %57 = vector.shape_cast %56 : vector<1x8x8xf32> to vector<8x8xf32>
      %58 = vector.shape_cast %55 : vector<8x8xf32> to vector<1x8x8xf32>
      tpu.vector_store %arg6[%c2, %c0_42, %c0_43], %58 {strides = array<i32>} : memref<4x8x8xf32, #tpu.memory_space<vmem>>, vector<1x8x8xf32>,
      %59 = vector.extract_strided_slice %30 {offsets = [0, 48], sizes = [8, 8], strides = [1, 1]} : vector<8x96xf32> to vector<8x8xf32>
      %c2_44 = arith.constant 2 : index
      %c0_45 = arith.constant 0 : index
      %c0_46 = arith.constant 0 : index
      %60 = vector.load %arg7[%c2_44, %c0_45, %c0_46] : memref<4x8x8xf32, #tpu.memory_space<vmem>>, vector<1x8x8xf32>
      %61 = vector.shape_cast %60 : vector<1x8x8xf32> to vector<8x8xf32>
      %62 = vector.shape_cast %59 : vector<8x8xf32> to vector<1x8x8xf32>
      tpu.vector_store %arg7[%c2_44, %c0_45, %c0_46], %62 {strides = array<i32>} : memref<4x8x8xf32, #tpu.memory_space<vmem>>, vector<1x8x8xf32>,
      %63 = vector.extract_strided_slice %30 {offsets = [0, 80], sizes = [8, 8], strides = [1, 1]} : vector<8x96xf32> to vector<8x8xf32>
      %c2_47 = arith.constant 2 : index
      %c0_48 = arith.constant 0 : index
      %c0_49 = arith.constant 0 : index
      %64 = vector.load %arg8[%c2_47, %c0_48, %c0_49] : memref<4x8x8xf32, #tpu.memory_space<vmem>>, vector<1x8x8xf32>
      %65 = vector.shape_cast %64 : vector<1x8x8xf32> to vector<8x8xf32>
      %66 = vector.shape_cast %63 : vector<8x8xf32> to vector<1x8x8xf32>
      tpu.vector_store %arg8[%c2_47, %c0_48, %c0_49], %66 {strides = array<i32>} : memref<4x8x8xf32, #tpu.memory_space<vmem>>, vector<1x8x8xf32>,
      %67 = vector.extract_strided_slice %30 {offsets = [0, 24], sizes = [8, 8], strides = [1, 1]} : vector<8x96xf32> to vector<8x8xf32>
      %c3 = arith.constant 3 : index
      %c0_50 = arith.constant 0 : index
      %c0_51 = arith.constant 0 : index
      %68 = vector.load %arg6[%c3, %c0_50, %c0_51] : memref<4x8x8xf32, #tpu.memory_space<vmem>>, vector<1x8x8xf32>
      %69 = vector.shape_cast %68 : vector<1x8x8xf32> to vector<8x8xf32>
      %70 = vector.shape_cast %67 : vector<8x8xf32> to vector<1x8x8xf32>
      tpu.vector_store %arg6[%c3, %c0_50, %c0_51], %70 {strides = array<i32>} : memref<4x8x8xf32, #tpu.memory_space<vmem>>, vector<1x8x8xf32>,
      %71 = vector.extract_strided_slice %30 {offsets = [0, 56], sizes = [8, 8], strides = [1, 1]} : vector<8x96xf32> to vector<8x8xf32>
      %c3_52 = arith.constant 3 : index
      %c0_53 = arith.constant 0 : index
      %c0_54 = arith.constant 0 : index
      %72 = vector.load %arg7[%c3_52, %c0_53, %c0_54] : memref<4x8x8xf32, #tpu.memory_space<vmem>>, vector<1x8x8xf32>
      %73 = vector.shape_cast %72 : vector<1x8x8xf32> to vector<8x8xf32>
      %74 = vector.shape_cast %71 : vector<8x8xf32> to vector<1x8x8xf32>
      tpu.vector_store %arg7[%c3_52, %c0_53, %c0_54], %74 {strides = array<i32>} : memref<4x8x8xf32, #tpu.memory_space<vmem>>, vector<1x8x8xf32>,
      %75 = vector.extract_strided_slice %30 {offsets = [0, 88], sizes = [8, 8], strides = [1, 1]} : vector<8x96xf32> to vector<8x8xf32>
      %c3_55 = arith.constant 3 : index
      %c0_56 = arith.constant 0 : index
      %c0_57 = arith.constant 0 : index
      %76 = vector.load %arg8[%c3_55, %c0_56, %c0_57] : memref<4x8x8xf32, #tpu.memory_space<vmem>>, vector<1x8x8xf32>
      %77 = vector.shape_cast %76 : vector<1x8x8xf32> to vector<8x8xf32>
      %78 = vector.shape_cast %75 : vector<8x8xf32> to vector<1x8x8xf32>
      tpu.vector_store %arg8[%c3_55, %c0_56, %c0_57], %78 {strides = array<i32>} : memref<4x8x8xf32, #tpu.memory_space<vmem>>, vector<1x8x8xf32>,
    } else {
    }
    %c8_i32 = arith.constant 8 : i32
    %3 = arith.muli %arg1, %c8_i32 : i32
    %4 = tpu.assume_multiple %3, 8 : i32
    %c0 = arith.constant 0 : index
    %5 = arith.index_cast %4 : i32 to index
    %c0_1 = arith.constant 0 : index
    %6 = vector.load %arg6[%c0, %5, %c0_1] : memref<4x8x8xf32, #tpu.memory_space<vmem>>, vector<4x8x8xf32>
    %c0_2 = arith.constant 0 : index
    %c0_3 = arith.constant 0 : index
    %c0_4 = arith.constant 0 : index
    %7 = vector.load %arg7[%c0_2, %c0_3, %c0_4] : memref<4x8x8xf32, #tpu.memory_space<vmem>>, vector<4x8x8xf32>
    %c0_5 = arith.constant 0 : index
    %c0_6 = arith.constant 0 : index
    %c0_7 = arith.constant 0 : index
    %8 = vector.load %arg8[%c0_5, %c0_6, %c0_7] : memref<4x8x8xf32, #tpu.memory_space<vmem>>, vector<4x8x8xf32>
    "tpu.trace_start"() <{level = 10 : i32, message = "hqd,hkd->hqk"}> : () -> ()
    %cst = arith.constant dense<0.000000e+00> : vector<4x8x8xf32>
    %9 = tpu.matmul %6, %7, %cst {dimension_numbers = #tpu.dot_dimension_numbers<[2], [2], [1], [1], [0, 0, 0, 1, 1, 1], [0], [0]>} : vector<4x8x8xf32>, vector<4x8x8xf32>, vector<4x8x8xf32> -> vector<4x8x8xf32>
    "tpu.trace_stop"() : () -> ()
    %cst_8 = arith.constant dense<0xFF800000> : vector<4x8xf32>
    %10 = vector.multi_reduction <maximumf>, %9, %cst_8 [2] : vector<4x8x8xf32> to vector<4x8xf32>
    %11 = vector.shape_cast %10 : vector<4x8xf32> to vector<4x8x1xf32>
    %12 = vector.broadcast %11 : vector<4x8x1xf32> to vector<4x8x8xf32>
    %13 = arith.subf %9, %12 : vector<4x8x8xf32>
    %14 = math.exp %13 : vector<4x8x8xf32>
    %cst_9 = arith.constant dense<0.000000e+00> : vector<4x8xf32>
    %15 = vector.multi_reduction <add>, %14, %cst_9 [2] : vector<4x8x8xf32> to vector<4x8xf32>
    %16 = vector.shape_cast %15 : vector<4x8xf32> to vector<4x8x1xf32>
    %17 = tpu.reciprocal %16 {approx = true} : vector<4x8x1xf32> -> vector<4x8x1xf32>
    %18 = vector.broadcast %17 : vector<4x8x1xf32> to vector<4x8x8xf32>
    %19 = arith.mulf %14, %18 : vector<4x8x8xf32>
    "tpu.trace_start"() <{level = 10 : i32, message = "hqk,hkd->hqd"}> : () -> ()
    %cst_10 = arith.constant dense<0.000000e+00> : vector<4x8x8xf32>
    %20 = tpu.matmul %19, %8, %cst_10 {dimension_numbers = #tpu.dot_dimension_numbers<[2], [1], [1], [2], [0, 0, 0, 1, 1, 2], [0], [0]>} : vector<4x8x8xf32>, vector<4x8x8xf32>, vector<4x8x8xf32> -> vector<4x8x8xf32>
    "tpu.trace_stop"() : () -> ()
    %c0_11 = arith.constant 0 : index
    %c0_12 = arith.constant 0 : index
    %c0_13 = arith.constant 0 : index
    %21 = vector.load %arg4[%c0_11, %c0_12, %c0_13] : memref<4x8x32xf32, #tpu.memory_space<vmem>>, vector<4x8x32xf32>
    "tpu.trace_start"() <{level = 10 : i32, message = "hqd,hdk->hqk"}> : () -> ()
    %cst_14 = arith.constant dense<0.000000e+00> : vector<4x8x32xf32>
    %22 = tpu.matmul %20, %21, %cst_14 {dimension_numbers = #tpu.dot_dimension_numbers<[2], [1], [1], [2], [0, 0, 0, 1, 1, 2], [0], [0]>} : vector<4x8x8xf32>, vector<4x8x32xf32>, vector<4x8x32xf32> -> vector<4x8x32xf32>
    "tpu.trace_stop"() : () -> ()
    %cst_15 = arith.constant dense<0.000000e+00> : vector<8x32xf32>
    %23 = vector.multi_reduction <add>, %22, %cst_15 [0] : vector<4x8x32xf32> to vector<8x32xf32>
    %c0_16 = arith.constant 0 : index
    %c0_17 = arith.constant 0 : index
    %c0_18 = arith.constant 0 : index
    %24 = vector.load %arg5[%c0_16, %c0_17, %c0_18] : memref<1x8x32xf32, #tpu.memory_space<vmem>>, vector<1x8x32xf32>
    %25 = vector.shape_cast %24 : vector<1x8x32xf32> to vector<8x32xf32>
    %26 = vector.shape_cast %23 : vector<8x32xf32> to vector<1x8x32xf32>
    tpu.vector_store %arg5[%c0_16, %c0_17, %c0_18], %26 {strides = array<i32>} : memref<1x8x32xf32, #tpu.memory_space<vmem>>, vector<1x8x32xf32>,
    return
  }
  func.func @transform_0(%arg0: i32, %arg1: i32) -> (i32, i32, i32) {
    %c0_i32 = arith.constant 0 : i32
    %c0_i32_0 = arith.constant 0 : i32
    %c0_i32_1 = arith.constant 0 : i32
    return %arg0, %c0_i32, %c0_i32_0 : i32, i32, i32
  }
  func.func @transform_1(%arg0: i32, %arg1: i32) -> (i32, i32) {
    %c0_i32 = arith.constant 0 : i32
    %c0_i32_0 = arith.constant 0 : i32
    %c0_i32_1 = arith.constant 0 : i32
    return %c0_i32, %c0_i32_0 : i32, i32
  }
  func.func @transform_2(%arg0: i32, %arg1: i32) -> (i32, i32, i32) {
    %c0_i32 = arith.constant 0 : i32
    %c0_i32_0 = arith.constant 0 : i32
    %c0_i32_1 = arith.constant 0 : i32
    %c0_i32_2 = arith.constant 0 : i32
    return %c0_i32, %c0_i32_0, %c0_i32_1 : i32, i32, i32
  }
  func.func @transform_3(%arg0: i32, %arg1: i32) -> (i32, i32, i32) {
    %c0_i32 = arith.constant 0 : i32
    %c0_i32_0 = arith.constant 0 : i32
    return %arg0, %arg1, %c0_i32 : i32, i32, i32
  }
}

</mosaic_0001>

<bundles_post_ra>
// kernel: tpu_custom_call.1
= control target key start
LH: loop header
LB: loop body
LE: loop exit
PB: predicated region body
PF: predicated region fallthrough
CT: control target
= control target key end

     0   :  { %8 = vsyncpa [#allocation6], 0  ;;  %s1364_s0 = inlined_call_operand.hbm [shape: f32[2,8,32], index: 0, kind: input, shape index: {}]   ;;  %s1365_s1 = inlined_call_operand.hbm [shape: f32[32,96], index: 1, kind: input, shape index: {}]   ;;  %s1366_s2 = inlined_call_operand.hbm [shape: f32[4,8,32], index: 2, kind: input, shape index: {}]   ;;  %s1367_s3 = inlined_call_operand.hbm [shape: f32[2,8,32], index: 3, kind: output, shape index: {}]  }
   0x1   :  { %10 = vsyncpa [#allocation6 + $0x1], 0 }
   0x2   :  { %11 = vsyncpa [#allocation9], 0 }
   0x3   :  { %12 = vsyncpa [#allocation7], 0 }
   0x4   :  { %14 = vsyncpa [#allocation7 + $0x1], 0  ;;  %s1160_s12 = smov 0   ;;  %s1162_s13 = smov 0  }
   0x5   :  { %s1164_s14 = smov 0   ;;  %s1166_s15 = smov 0  }
   0x6   :  { %s1168_s16 = smov 0   ;;  %s1170_s17 = smov 0  }
   0x7 LB: > { %s801_s18 = sadd.s32 4294967295, %s1123_s17   ;;  %p803_p0 = scmp.ge.s32.totalorder %s1123_s17, 1  ;;  %s1123_s17 = sphi %s1170_s17, %s20_s17   ;;  %s1119_s16 = sphi %s1168_s16, %s1377_s16   ;;  %s1115_s15 = sphi %s1166_s15, %s1376_s15   ;;  %s1111_s14 = sphi %s1164_s14, %s1375_s14   ;;  %s1107_s13 = sphi %s1162_s13, %s1374_s13   ;;  %s1103_s12 = sphi %s1160_s12, %s1373_s12  }
   0x8   : > { %p1194_p1 = scmp.eq.s32.totalorder %s801_s18, 0  ;;  %p133_p2 = scmp.lt.s32.totalorder %s1123_s17, 3 }
   0x9   : > { %s144_s22 = sshll.u32 %s1365_s1, 4  ;;  %s1125_s24 = smov [#allocation8]   ;;  %s145_s22 = int_to_ptr.hbm [resolvable:$true] %s144_s22 }
   0xa   : > { %p1202_p3 = pnand %p803_p0, %p133_p2  ;;  %s146_s25 = sshll.u32 %s1125_s24, 4  ;;  %s147_s25 = int_to_ptr.vmem [resolvable:$true] %s146_s25 }
   0xb   : > { %p806_p6 = scmp.ge.s32.totalorder %s1123_s17, 2  ;;  %s158_s28 = sshll.u32 %s1366_s2, 4  ;;  %s159_s28 = int_to_ptr.hbm [resolvable:$true] %s158_s28 }
   0xc   : > { %p847_p4 = pneg %p1202_p3  ;;  %s1126_s29 = smov 128  }
   0xd   : > { %s1127_s30 = smov 8   ;;  %s1128_s4 = smov [#allocation10]  }
   0xe   : > { %p848_p5 = pnand %p847_p4, %p1194_p1  ;;  %s160_s5 = sshll.u32 %s1128_s4, 4  ;;  %s161_s5 = int_to_ptr.vmem [resolvable:$true] %s160_s5 }
   0xf   : > { %s32_s6 = sadd.s32 1, %s1119_s16  ;;  %s802_s7 = sadd.s32 4294967294, %s1123_s17  }
  0x10   : > { %850 = dma.hbm_to_vmem [thread:$0]  (!%p848_p5), %s145_s22, 512, %s147_s25, [#allocation9], %s1126_s29, %s1126_s29, %s1127_s30  }
  0x11   : > { %853 = dma.hbm_to_vmem [thread:$0]  (!%p848_p5), %s159_s28, 512, %s161_s5, [#allocation9], %s1126_s29, %s1126_s29, %s1127_s30  }
  0x12   : > { %p34_p7 = scmp.ge.s32.totalorder %s32_s6, 2  ;;  %s39_s8 = sadd.s32 1, %s1111_s14 }
  0x13   : > { %p46_p8 = scmp.ne.s32.totalorder %s1111_s14, %s1107_s13  ;;  %p47_p9 = scmp.eq.s32.totalorder %s1123_s17, 0 }
  0x14   : > { %s1379_s6 = smov (%p34_p7, %s32_s6), 0  ;;  %p52_p10 = scmp.ne.s32.totalorder %s1107_s13, %s1103_s12 }
  0x15   : > { %s36_s9 = ssub.s32 %s1119_s16, %s1379_s6  ;;  %p120_p11 = scmp.eq.s32.totalorder %s801_s18, 1 }
  0x16   : > { %p37_p12 = scmp.eq.s32.totalorder %s36_s9, 0  ;;  %p1230_p13 = por %p1194_p1, %p52_p10 }
  0x17   : > { %p1234_p0 = por %p120_p11, %p46_p8  ;;  %p126_p2 = scmp.eq.s32.totalorder %s802_s7, 1 }
  0x18   : > { %s1239_s20 = scalar_select %p37_p12, %s1111_s14, %s39_s8  }
  0x19   : > { %p48_p4 = por %p47_p9, %p46_p8  ;;  %p1241_p5 = por %p126_p2, %p52_p10 }
  0x1a   : > { %s174_s22 = sand.u32 1, %s1111_s14   ;;  %s808_s18 = sshll.u32 %s1119_s16, 3 }
  0x1b   : > { %p864_p7 = scmp.lt.s32.totalorder %s1123_s17, 2  ;;  %s807_s24 = sshll.u32 %s174_s22, 3 }
  0x1c   : > { %s182_s27 = scalar_lea.hbm %s1364_s0, %s808_s18  ;;  %s178_s29 = scalar_lea.vmem [#allocation5], %s807_s24 }
  0x1d   : > { %s184_s28 = sshll.u32 %s182_s27, 4  ;;  %s186_s30 = sshll.u32 %s178_s29, 4  ;;  %s185_s28 = int_to_ptr.hbm [resolvable:$true] %s184_s28  ;;  %s187_s30 = int_to_ptr.vmem [resolvable:$true] %s186_s30 }
  0x1e   : > { %p855_p11 = pnand %p864_p7, %p48_p4  ;;  %s175_s4 = scalar_lea.sflag [#allocation6], %s174_s22 }
  0x1f   : > { %195 = sbr.rel (%p1202_p3) target bundleno = 967 (0x3c7), region = 32  ;;  %s1254_s5 = sand.u32 (!%p1202_p3), 1, %s1107_s13  }
  0x20   : > { %857 = dma.hbm_to_vmem [thread:$0]  (!%p855_p11), %s185_s28, 128, %s187_s30, %s175_s4  }
  0x21   : > { %s810_s7 = sshll.u32 (!%p1202_p3), %s1254_s5, 3  ;;  %s198_s8 = scalar_lea.sflag (!%p1202_p3), [#allocation6], %s1254_s5 }
  0x22   : > { %s201_s9 = scalar_lea.vmem (!%p1202_p3), [#allocation5], %s810_s7 }
  0x24   : > { %1090 = dma.done.wait (%p1230_p13), %s198_s8, 128  }
  0x25   : > { %1092 = vsyncadd (%p1230_p13), %s198_s8, 4294967168 }
  0x26   : > { %1094 = dma.done.wait (%p1194_p1), [#allocation9], 1024  }
  0x27   : > { %1096 = vsyncadd (%p1194_p1), [#allocation9], 4294966272  ;;  %v243_v0 = vld [vmem:[#allocation8 + $0x18] sm:$0xff]  ;;  %v242_v1 = vld [vmem:[#allocation8 + $0x10] sm:$0xff]  ;;  %vm244_vm0 = vcmask 261120   ;;  %vm268_vm1 = vcmask 64512  }
  0x28   : > { %260 = vmatpush.msra.mxu0 %v243_v0  ;;  %v241_v2 = vld [vmem:[#allocation8 + $0x8] sm:$0xff]  ;;  %v240_v3 = vld [vmem:[#allocation8] sm:$0xff]  ;;  %v239_v4 = vld [vmem:[%s201_s9] sm:$0xff]  ;;  %s1129_s23 = smov 112   ;;  %s1130_s19 = smov 96  }
  0x29   : > { %s1131_s10 = smov 88   ;;  %s1132_s22 = smov 72  }
  0x2a   : > { %261 = vmatpush.msra.mxu0 %v242_v1  ;;  %s1133_s18 = smov 80   ;;  %s1134_s24 = smov 120  }
  0x2b   : > { %s1135_s25 = smov 104   ;;  %s1136_s26 = smov 56  }
  0x2c   : > { %262 = vmatpush.msra.mxu0 %v241_v2  ;;  %s1137_s27 = smov 64   ;;  %s1138_s28 = smov 40  }
  0x2d   : > { %s1139_s29 = smov 48   ;;  %s832_s30 = sshll.u32 %s1115_s15, 3 }
  0x2e   : > { %263 = vmatpush.msra.mxu0 %v240_v3  ;;  %s696_s9 = scalar_lea.hbm %s1367_s3, %s832_s30 }
  0x2f   : > { %814 = vmatmul.msk.f32.vlgmr.msra.gmra.mxu0 %vm244_vm0, %v239_v4 }
  0xac   : > { %v1269_v5 = vpop.f32.mrf.mxu0 }
  0xad   : > { %294 = vrot.lane.b32.xlu2 %v1269_v5, %s1129_s23  ;;  %271 = vrot.lane.b32.xlu1 %v1269_v5, %s1130_s19  ;;  %269 = vst.msk [vmem:[#allocation2] sm:$0xff] %vm268_vm1, %v1269_v5  ;;  %s234_s23 = scalar_lea.vmem [#allocation11], %s810_s7  ;;  %s700_s19 = sshll.u32 %s696_s9, 4  ;;  %s701_s19 = int_to_ptr.hbm [resolvable:$true] %s700_s19 }
  0xae   : > { %284 = vrot.lane.b32.xlu0 %v1269_v5, %s1131_s10  ;;  %s698_s15 = sshll.u32 %s234_s23, 4  ;;  %s685_s10 = scalar_lea.sflag [#allocation7], %s1254_s5  ;;  %s699_s15 = int_to_ptr.vmem [resolvable:$true] %s698_s15 }
  0xb4   : > { %v326_v15 = vld [vmem:[#allocation2] sm:$0xff] }
  0xb5   : > { %314 = vrot.lane.b32.xlu2 %v1269_v5, %s1132_s22  ;;  %299 = vrot.lane.b32.xlu1 %v1269_v5, %s1133_s18  ;;  %s1051_s22 = sshra.s32 %s701_s19, 4  ;;  %s1052_s22 = int_to_ptr.hbm [resolvable:$true] %s1051_s22 }
  0xb6   : > { %279 = vrot.lane.b32.xlu0 %v1269_v5, %s1134_s24  ;;  %s1053_s18 = scalar_lea.hbm %s1052_s22, 8  ;;  %p1058_p9 = scmp.lt.s32.totalorder %s1052_s22, %s1367_s3 }
  0xb7   : > { %p1054_p1 = scmp.ne.s32.totalorder %s1052_s22, %s1053_s18 }
  0xb9   : > { %p1055_p3 = pnand %p1054_p1, %p1234_p0 }
  0xbb   : > { %p1056_p8 = pneg %p1055_p3 }
  0xbe   : > { %309 = vrot.lane.b32.xlu0 %v1269_v5, %s1135_s25  ;;  %s1057_s25 = scalar_lea.hbm %s1367_s3, 16 }
  0xbf   : > { %p1059_p10 = scmp.lt.s32.totalorder %s1057_s25, %s1053_s18 }
  0xc1   : > { %p1060_p12 = por %p1059_p10, %p1058_p9 }
  0xc3   : > { %p1061_p13 = pnand %p1060_p12, %p1056_p8 }
 0x107   : > { %v295_v6 = vpop.permute.xlu2 %294 }
 0x108   : > { %298 = vst.msk [vmem:[#allocation2 + $0x10] sm:$0xff] %vm268_vm1, %v295_v6  ;;  %v580_v6 = vld [vmem:[#allocation10 + $0x8] sm:$0xff] }
 0x10f   : > { %v315_v7 = vpop.permute.xlu2 %314  ;;  %v328_v19 = vld [vmem:[#allocation2 + $0x10] sm:$0xff] }
 0x110   : > { %318 = vst.msk [vmem:[#allocation3 + $0x18] sm:$0xff] %vm268_vm1, %v315_v7  ;;  %v582_v7 = vld [vmem:[#allocation10 + $0x18] sm:$0xff] }
 0x117   : > { %v333_v14 = vld [vmem:[#allocation3 + $0x18] sm:$0xff] }
 0x11f   : > { %v272_v8 = vpop.permute.xlu1 %271 }
 0x120   : > { %274 = vst.msk [vmem:[#allocation3] sm:$0xff] %vm268_vm1, %v272_v8  ;;  %v285_v9 = vpop.permute.xlu0 %284  ;;  %v581_v8 = vld [vmem:[#allocation10 + $0x10] sm:$0xff] }
 0x121   : > { %288 = vst.msk [vmem:[#allocation3 + $0x8] sm:$0xff] %vm268_vm1, %v285_v9 }
 0x127   : > { %v300_v10 = vpop.permute.xlu1 %299  ;;  %v330_v11 = vld [vmem:[#allocation3] sm:$0xff] }
 0x128   : > { %303 = vst.msk [vmem:[#allocation3 + $0x10] sm:$0xff] %vm268_vm1, %v300_v10  ;;  %v280_v12 = vpop.permute.xlu0 %279  ;;  %815 = vmatpush.xpose.msk.msra.mxu1 %vm268_vm1, %v330_v11  ;;  %v331_v13 = vld [vmem:[#allocation3 + $0x8] sm:$0xff] }
 0x129   : > { %283 = vst.msk [vmem:[#allocation2 + $0x8] sm:$0xff] %vm268_vm1, %v280_v12  ;;  %817 = vmatpush.xpose.msk.msra.mxu2 %vm268_vm1, %v331_v13 }
 0x12b   : > { %816 = vmatmul.msk.f32.vlgmr.msra.gmra.mxu1 %vm268_vm1, %v326_v15 }
 0x12c   : > { %821 = vmatpush.xpose.msk.msrb.mxu1 %vm268_vm1, %v333_v14 }
 0x12f   : > { %v332_v16 = vld [vmem:[#allocation3 + $0x10] sm:$0xff] }
 0x130   : > { %v310_v17 = vpop.permute.xlu0 %309  ;;  %v327_v18 = vld [vmem:[#allocation2 + $0x8] sm:$0xff]  ;;  %819 = vmatpush.xpose.msk.msra.mxu3 %vm268_vm1, %v332_v16 }
 0x131   : > { %313 = vst.msk [vmem:[#allocation2 + $0x18] sm:$0xff] %vm268_vm1, %v310_v17  ;;  %818 = vmatmul.msk.f32.vlgmr.msra.gmra.mxu2 %vm268_vm1, %v327_v18 }
 0x133   : > { %820 = vmatmul.msk.f32.vlgmr.msra.gmra.mxu3 %vm268_vm1, %v328_v19 }
 0x138   : > { %v329_v20 = vld [vmem:[#allocation2 + $0x18] sm:$0xff] }
 0x139   : > { %822 = vmatmul.msk.f32.vlgmr.msrb.gmra.mxu1 %vm268_vm1, %v329_v20 }
 0x1a8   : > { %v362_v21 = vpop.f32.mrf.mxu1 }
 0x1a9   : > { %v443_v22 = vsel %vm268_vm1, %v362_v21, -inf }
 0x1aa   : > { %444 = vmax.xlane.f32.xlu1 %v443_v22 }
 0x1b4   : > { %v388_v23 = vpop.f32.mrf.mxu2 }
 0x1b5   : > { %v446_v24 = vsel %vm268_vm1, %v388_v23, -inf }
 0x1b6   : > { %447 = vmax.xlane.f32.xlu2 %v446_v24  ;;  %v414_v25 = vpop.f32.mrf.mxu3  ;;  %v440_v27 = vpop.f32.mrf.mxu1 }
 0x1b7   : > { %v449_v26 = vsel %vm268_vm1, %v414_v25, -inf  ;;  %v452_v28 = vsel %vm268_vm1, %v440_v27, -inf }
 0x1b8   : > { %450 = vmax.xlane.f32.xlu0 %v449_v26 }
 0x1be   : > { %453 = vmax.xlane.f32.xlu2 %v452_v28 }
 0x1c3   : > { %289 = vrot.lane.b32.xlu1 %v1269_v5, %s1136_s26 }
 0x1cc   : > { %275 = vrot.lane.b32.xlu0 %v1269_v5, %s1137_s27 }
 0x21d   : > { %v445_v29 = vpop.xlane.xlu1 %444 }
 0x21e   : > { %v455_v30 = vsub.f32 %v362_v21, %v445_v29 }
 0x220   : > { %v459_v31 = vmul.f32 1.442695, %v455_v30 }
 0x222   : > { %931 = vpow2.f32 %v459_v31 }
 0x228   : > { %v932_v32 = vpop.eup %931 }
 0x229   : > { %v448_v33 = vpop.xlane.xlu2 %447  ;;  %v467_v34 = vsel %vm268_vm1, %v932_v32, 0.0 }
 0x22a   : > { %v456_v35 = vsub.f32 %v388_v23, %v448_v33  ;;  %468 = vadd.xlane.f32.xlu1 %v467_v34 }
 0x22b   : > { %v451_v36 = vpop.xlane.xlu0 %450 }
 0x22c   : > { %v461_v37 = vmul.f32 1.442695, %v456_v35  ;;  %v457_v38 = vsub.f32 %v414_v25, %v451_v36 }
 0x22e   : > { %933 = vpow2.f32 %v461_v37  ;;  %v463_v39 = vmul.f32 1.442695, %v457_v38 }
 0x230   : > { %935 = vpow2.f32 %v463_v39 }
 0x231   : > { %v454_v40 = vpop.xlane.xlu2 %453 }
 0x232   : > { %v458_v41 = vsub.f32 %v440_v27, %v454_v40 }
 0x234   : > { %v934_v42 = vpop.eup %933  ;;  %v465_v43 = vmul.f32 1.442695, %v458_v41 }
 0x235   : > { %v290_v44 = vpop.permute.xlu1 %289  ;;  %v470_v45 = vsel %vm268_vm1, %v934_v42, 0.0 }
 0x236   : > { %937 = vpow2.f32 %v465_v43  ;;  %293 = vst.msk [vmem:[#allocation4 + $0x8] sm:$0xff] %vm268_vm1, %v290_v44  ;;  %471 = vadd.xlane.f32.xlu2 %v470_v45  ;;  %v936_v46 = vpop.eup %935 }
 0x237   : > { %v473_v48 = vsel %vm268_vm1, %v936_v46, 0.0 }
 0x23c   : > { %v938_v47 = vpop.eup %937 }
 0x23d   : > { %v476_v49 = vsel %vm268_vm1, %v938_v47, 0.0  ;;  %v335_v50 = vld [vmem:[#allocation4 + $0x8] sm:$0xff] }
 0x23e   : > { %474 = vadd.xlane.f32.xlu2 %v473_v48  ;;  %477 = vadd.xlane.f32.xlu0 %v476_v49  ;;  %v276_v51 = vpop.permute.xlu0 %275 }
 0x23f   : > { %278 = vst.msk [vmem:[#allocation4] sm:$0xff] %vm268_vm1, %v276_v51  ;;  %528 = vmatpush.msrb.mxu3 %v335_v50 }
 0x241   : > { %624 = vmatpush.msra.mxu3 %v580_v6 }
 0x243   : > { %319 = vrot.lane.b32.xlu1 %v1269_v5, %s1138_s28 }
 0x246   : > { %v334_v52 = vld [vmem:[#allocation4] sm:$0xff] }
 0x247   : > { %505 = vmatpush.msrb.mxu2 %v334_v52 }
 0x256   : > { %304 = vrot.lane.b32.xlu2 %v1269_v5, %s1139_s29  ;;  %v579_v5 = vld [vmem:[#allocation10] sm:$0xff] }
 0x257   : > { %601 = vmatpush.msra.mxu2 %v579_v5 }
 0x29d   : > { %v469_v53 = vpop.xlane.xlu1 %468 }
 0x29e   : > { %939 = vrcp.f32 %v469_v53 }
 0x2a4   : > { %v940_v54 = vpop.eup %939 }
 0x2a5   : > { %v483_v55 = vmul.f32 %v940_v54, %v932_v32 }
 0x2a7   : > { %823 = vmatmul.msk.f32.vlgmr.msrb.gmra.mxu2 %vm268_vm1, %v483_v55 }
 0x2a9   : > { %v472_v56 = vpop.xlane.xlu2 %471 }
 0x2aa   : > { %941 = vrcp.f32 %v472_v56 }
 0x2b0   : > { %v942_v57 = vpop.eup %941 }
 0x2b1   : > { %v478_v58 = vpop.xlane.xlu0 %477  ;;  %v475_v59 = vpop.xlane.xlu2 %474  ;;  %v484_v60 = vmul.f32 %v942_v57, %v934_v42 }
 0x2b2   : > { %943 = vrcp.f32 %v478_v58 }
 0x2b3   : > { %824 = vmatmul.msk.f32.vlgmr.msrb.gmra.mxu3 %vm268_vm1, %v484_v60  ;;  %945 = vrcp.f32 %v475_v59 }
 0x2b5   : > { %v320_v61 = vpop.permute.xlu1 %319 }
 0x2b6   : > { %323 = vst.msk [vmem:[#allocation4 + $0x18] sm:$0xff] %vm268_vm1, %v320_v61 }
 0x2b8   : > { %v944_v63 = vpop.eup %943 }
 0x2b9   : > { %v305_v62 = vpop.permute.xlu2 %304  ;;  %v486_v0 = vmul.f32 %v944_v63, %v938_v47  ;;  %v946_v2 = vpop.eup %945 }
 0x2ba   : > { %308 = vst.msk [vmem:[#allocation4 + $0x10] sm:$0xff] %vm268_vm1, %v305_v62  ;;  %v485_v4 = vmul.f32 %v946_v2, %v936_v46 }
 0x2bd   : > { %v337_v1 = vld [vmem:[#allocation4 + $0x18] sm:$0xff] }
 0x2be   : > { %574 = vmatpush.msra.mxu1 %v337_v1 }
 0x2bf   : > { %826 = vmatmul.msk.f32.vlgmr.msra.gmra.mxu1 %vm268_vm1, %v486_v0 }
 0x2c0   : > { %670 = vmatpush.msrb.mxu1 %v582_v7 }
 0x2c1   : > { %v336_v3 = vld [vmem:[#allocation4 + $0x10] sm:$0xff] }
 0x2c2   : > { %551 = vmatpush.msrb.mxu0 %v336_v3 }
 0x2c3   : > { %825 = vmatmul.msk.f32.vlgmr.msrb.gmra.mxu0 %vm268_vm1, %v485_v4 }
 0x2c4   : > { %647 = vmatpush.msra.mxu0 %v581_v8 }
 0x32a   : > { %v507_v9 = vpop.f32.mrf.mxu2 }
 0x32b   : > { %827 = vmatmul.msk.f32.vlgmr.msra.gmra.mxu2 %vm268_vm1, %v507_v9 }
 0x336   : > { %v530_v10 = vpop.f32.mrf.mxu3 }
 0x337   : > { %828 = vmatmul.msk.f32.vlgmr.msra.gmra.mxu3 %vm268_vm1, %v530_v10 }
 0x33c   : > { %v576_v11 = vpop.f32.mrf.mxu1 }
 0x33d   : > { %830 = vmatmul.msk.f32.vlgmr.msrb.gmra.mxu1 %vm268_vm1, %v576_v11 }
 0x340   : > { %v553_v12 = vpop.f32.mrf.mxu0 }
 0x341   : > { %829 = vmatmul.msk.f32.vlgmr.msra.gmra.mxu0 %vm268_vm1, %v553_v12 }
 0x3ae   : > { %v603_v13 = vpop.f32.mrf.mxu2 }
 0x3af   : > { %v676_v16 = vsel %vm244_vm0, %v603_v13, 0.0 }
 0x3ba   : > { %v626_v14 = vpop.f32.mrf.mxu3  ;;  %v672_v18 = vpop.f32.mrf.mxu1 }
 0x3bb   : > { %v677_v15 = vsel %vm244_vm0, %v626_v14, 0.0  ;;  %v681_v22 = vsel %vm244_vm0, %v672_v18, 0.0 }
 0x3bc   : > { %v678_v17 = vadd.f32 %v677_v15, %v676_v16 }
 0x3be   : > { %v649_v19 = vpop.f32.mrf.mxu0 }
 0x3bf   : > { %v679_v20 = vsel %vm244_vm0, %v649_v19, 0.0 }
 0x3c0   : > { %v680_v21 = vadd.f32 %v679_v20, %v678_v17 }
 0x3c2   : > { %v682_v23 = vadd.f32 %v681_v22, %v680_v21 }
 0x3c4   : > { %683 = vst.msk [vmem:[%s234_s23] sm:$0xff] %vm244_vm0, %v682_v23 }
 0x3c5   : > { %1064 = shalt.err (!%p1061_p13)
}
 0x3c6   : > { %845 = dma.vmem_to_hbm [thread:$0]  (%p1234_p0), %s699_s15, 128, %s701_s19, %s685_s10  }
 0x3c7 PF: > { %s712_s5 = sand.u32 1, %s1103_s12   ;;  %p859_p2 = pnand %p806_p6, %p1241_p5 }
 0x3c8   : > { %s713_s28 = scalar_lea.sflag [#allocation7], %s712_s5 }
 0x3c9   : > { %p860_p4 = pneg %p859_p2 }
 0x3cb   : > { %1098 = dma.done.wait (%p860_p4), %s713_s28, 128  }
 0x3cc   : > { %1100 = vsyncadd (%p860_p4), %s713_s28, 4294967168  ;;  %s20_s17 = sadd.s32 1, %s1123_s17   ;;  %s1373_s12 = smov %s1107_s13 }
 0x3cd   : > { %p17_p7 = scmp.ge.s32.totalorder %s20_s17, 4   ;;  %s1374_s13 = smov %s1111_s14 }
 0x3ce   : > { %s1375_s14 = smov %s1239_s20  ;;  %s1376_s15 = smov %s1119_s16 }
 0x3cf   : > { %s1377_s16 = smov %s1379_s6  ;;  %19 = sbr.rel (!%p17_p7) target bundleno = 7 (0x7), region = 99 }
 0x3d4   :  { %719 = vsyncpa [#allocation6], 1 }
 0x3d5   :  { %721 = vsyncpa [#allocation6 + $0x1], 1 }
 0x3d6   :  { %722 = vsyncpa [#allocation9], 1 }
 0x3d7   :  { %723 = vsyncpa [#allocation7], 1 }
 0x3d8   :  { %725 = vsyncpa [#allocation7 + $0x1], 1 }

</bundles_post_ra>
